<compile_context>
chip_gen: v6e
topology: v6e:2x2x1
jax: 0.10.0
libtpu: 0.0.40
codegen_flags: <defaults>
</compile_context>

<pallas_src>
import jax
import jax.numpy as jnp
from jax.experimental import pallas as pl
from jax.experimental.pallas import tpu as pltpu

NEG_SLOPE = 0.2
LANE = 128


def _leaky(x):
    return jnp.where(x > 0, x, NEG_SLOPE * x)


def make_disc_kernel(layer_num):
    """Conv1d(k=1) stack + LeakyReLU + running-max pool + fused MLP head."""

    def kernel(x_ref, *refs):
        # refs: [convW, convB]*layer_num, fc1_w, fc1_b, fc2_w, fc2_b,
        #       fc3_w(padded), fc3_b(padded), out1_ref, out_ref
        conv_refs = refs[:2 * layer_num]
        w1, b1, w2, b2, w3, b3 = refs[2 * layer_num:2 * layer_num + 6]
        out1_ref, out_ref = refs[-2:]

        k = pl.program_id(1)
        last_k = pl.num_programs(1) - 1

        @pl.when(k == 0)
        def _init():
            out1_ref[...] = jnp.full_like(out1_ref, -jnp.inf)
            out_ref[...] = jnp.zeros_like(out_ref)

        # Conv1d(kernel_size=1) stack == per-point matmul (channels-last).
        feat = x_ref[...]                              # (batch_tile, TN, C0) bf16
        for i in range(layer_num):
            w = conv_refs[2 * i][...]                  # (C_in, C_out) bf16
            b = conv_refs[2 * i + 1][...]              # (1, C_out)    f32
            acc = jnp.einsum("btc,cd->btd", feat.astype(jnp.bfloat16), w,
                             preferred_element_type=jnp.float32)
            feat = _leaky(acc + b)                     # bias + activation in f32

        # Vectorized max over this point tile, folded into the resident
        # running-max accumulator (== max_pool1d over the whole point axis).
        tile_max = jnp.max(feat, axis=1)               # (batch_tile, Cf) f32
        out1_ref[...] = jnp.maximum(out1_ref[...], tile_max)

        # Fused MLP head on the final point tile (out1 is complete here).
        @pl.when(k == last_k)
        def _head():
            pooled = out1_ref[...].astype(jnp.bfloat16)
            h = _leaky(jnp.dot(pooled, w1[...],
                               preferred_element_type=jnp.float32) + b1[...])
            h = _leaky(jnp.dot(h.astype(jnp.bfloat16), w2[...],
                               preferred_element_type=jnp.float32) + b2[...])
            logit = jnp.dot(h.astype(jnp.bfloat16), w3[...],
                            preferred_element_type=jnp.float32) + b3[...]
            out_ref[...] = 1.0 / (1.0 + jnp.exp(-logit))   # lane-dense (bt, 128)

    return kernel


def _pick_point_tile(n_points, batch_tile, target_rows=1024):
    """Largest TN dividing N with TN % 8 == 0 (or TN == N), batch_tile*TN ~ target."""
    cap = max(8, target_rows // max(batch_tile, 1))
    if n_points <= cap or n_points % 8 != 0:
        return n_points
    best = None
    t = 8
    while t <= min(n_points, cap):
        if n_points % t == 0:
            best = t
        t += 8
    return best if best is not None else n_points


def _vmem_limit_bytes(batch_tile, point_tile, c0, out_channels, cf, weight_bytes):
    rows = batch_tile * point_tile
    x_tile = rows * c0 * 2                              # bf16 input tile
    inter = rows * sum(out_channels) * 6                # f32 act + bf16 copy / layer
    outs = batch_tile * (cf + LANE) * 4 * 2
    est = 2 * x_tile + inter + 2 * weight_bytes + outs  # 2x: double buffering
    est = int(est * 1.5) + (4 << 20)                    # headroom
    return int(min(max(est, 16 << 20), 64 << 20))       # v7x physical cap ~64 MiB


def discriminator_forward(x, params, batch_tile=None, point_tile=None):
    """x: (B, N, C0) float32.  Returns (out (B, 1), out1 (B, Cf))."""
    layer_num = len(params["conv_w"])
    B, N, C0 = x.shape
    Cf = params["conv_w"][-1].shape[1]

    # batch_tile: default = B (single chunk; best on single-TC v5e/v6e).
    # On v7x pass batch_tile <= B//2 so the "parallel" axis uses both TCs.
    if batch_tile is None:
        batch_tile = B
    assert B % batch_tile == 0, "batch_tile must divide B"
    assert batch_tile == B or batch_tile % 8 == 0, (
        "batch_tile must equal B or be a multiple of 8 (out BlockSpec sublane dim)")

    if point_tile is None:
        point_tile = _pick_point_tile(N, batch_tile)
    assert N % point_tile == 0, "point_tile must divide N"
    assert point_tile == N or point_tile % 8 == 0, (
        "point_tile must equal N or be a multiple of 8 (x BlockSpec sublane dim)")

    num_chunks = B // batch_tile
    num_ptiles = N // point_tile

    # bf16 operands for the MXU; biases stay f32 (bias/act/pool done in f32).
    x_bf = x.astype(jnp.bfloat16)
    conv_w = [w.astype(jnp.bfloat16) for w in params["conv_w"]]
    conv_b = list(params["conv_b"])
    fc1_w = params["fc1_w"].astype(jnp.bfloat16)
    fc2_w = params["fc2_w"].astype(jnp.bfloat16)
    # Pad the last Linear (64 -> 1) to 128 output lanes: lane-dense store; the
    # real logit lives in lane 0 (padded lanes hold sigmoid(0) = 0.5).
    fc3_wp = jnp.pad(params["fc3_w"],
                     ((0, 0), (0, LANE - params["fc3_w"].shape[1]))).astype(jnp.bfloat16)
    fc3_bp = jnp.pad(params["fc3_b"],
                     ((0, 0), (0, LANE - params["fc3_b"].shape[1])))

    weight_args = []
    for w, b in zip(conv_w, conv_b):
        weight_args += [w, b]
    weight_args += [fc1_w, params["fc1_b"], fc2_w, params["fc2_b"], fc3_wp, fc3_bp]
    weight_bytes = sum(int(p.size) * p.dtype.itemsize for p in weight_args)

    # TODO(synk): once tiles are large, sweep pipeline_mode=pl.Buffered(3) on the
    # x BlockSpec to hide an exposed x-tile DMA (check VMEM budget on v7x).
    in_specs = [pl.BlockSpec((batch_tile, point_tile, C0), lambda i, k: (i, k, 0))]
    for p in weight_args:  # weights/biases: constant full-array blocks
        in_specs.append(pl.BlockSpec(p.shape, lambda i, k: (0, 0)))

    out_shapes = (jax.ShapeDtypeStruct((B, Cf), jnp.float32),
                  jax.ShapeDtypeStruct((B, LANE), jnp.float32))
    out_specs = (pl.BlockSpec((batch_tile, Cf), lambda i, k: (i, 0)),   # resident acc
                 pl.BlockSpec((batch_tile, LANE), lambda i, k: (i, 0)))

    vmem_limit = _vmem_limit_bytes(
        batch_tile, point_tile, C0,
        [w.shape[1] for w in params["conv_w"]], Cf, weight_bytes)

    out1, out_padded = pl.pallas_call(
        make_disc_kernel(layer_num),
        out_shape=out_shapes,
        grid_spec=pltpu.PrefetchScalarGridSpec(
            num_scalar_prefetch=0,
            grid=(num_chunks, num_ptiles),
            in_specs=in_specs,
            out_specs=out_specs,
        ),
        compiler_params=pltpu.CompilerParams(
            dimension_semantics=("parallel", "arbitrary"),
            vmem_limit_bytes=vmem_limit),
    )(x_bf, *weight_args)

    return out_padded[:, :1], out1


def init_params(key, features):
    """Deterministic synthetic parameters matching the PyTorch module shapes.

    Conv1d(in, out, k=1) weight (out, in, 1) is stored transposed as (in, out).
    Linear(in, out) weight (out, in) is stored transposed as (in, out).
    """
    layer_num = len(features) - 1
    n_keys = 2 * (layer_num + 3)
    keys = jax.random.split(key, n_keys)
    ki = iter(range(n_keys))

    conv_w, conv_b = [], []
    for i in range(layer_num):
        fan_in = features[i]
        w = jax.random.normal(keys[next(ki)], (features[i], features[i + 1]),
                              jnp.float32) / jnp.sqrt(float(fan_in))
        b = 0.01 * jax.random.normal(keys[next(ki)], (1, features[i + 1]), jnp.float32)
        conv_w.append(w)
        conv_b.append(b)

    def linear(k1, k2, fin, fout):
        w = jax.random.normal(k1, (fin, fout), jnp.float32) / jnp.sqrt(float(fin))
        b = 0.01 * jax.random.normal(k2, (1, fout), jnp.float32)
        return w, b

    fc1_w, fc1_b = linear(keys[next(ki)], keys[next(ki)], features[-1], 128)
    fc2_w, fc2_b = linear(keys[next(ki)], keys[next(ki)], 128, 64)
    fc3_w, fc3_b = linear(keys[next(ki)], keys[next(ki)], 64, 1)

    return dict(conv_w=conv_w, conv_b=conv_b,
                fc1_w=fc1_w, fc1_b=fc1_b,
                fc2_w=fc2_w, fc2_b=fc2_b,
                fc3_w=fc3_w, fc3_b=fc3_b)


def reference_forward(x, params):
    """Plain-JAX f32 reference with identical semantics (for verification)."""
    hi = jax.lax.Precision.HIGHEST
    feat = x  # (B, N, C)
    for W, b in zip(params["conv_w"], params["conv_b"]):
        feat = _leaky(jnp.einsum("bnc,cd->bnd", feat, W, precision=hi) + b)
    out1 = jnp.max(feat, axis=1)  # (B, Cf)
    h = _leaky(jnp.dot(out1, params["fc1_w"], precision=hi) + params["fc1_b"])
    h = _leaky(jnp.dot(h, params["fc2_w"], precision=hi) + params["fc2_b"])
    out = jax.nn.sigmoid(jnp.dot(h, params["fc3_w"], precision=hi) + params["fc3_b"])
    return out, out1


if __name__ == "__main__":
    features = [8, 64, 128]   # Conv1d stack: 8 -> 64 -> 128
    B, N = 2, 32              # batch=2, 32 "vertices"/points

    key = jax.random.PRNGKey(0)
    kx, kp = jax.random.split(key)
    x = jax.random.normal(kx, (B, N, features[0]), jnp.float32)
    params = init_params(kp, features)

    # point_tile=8 -> 4 point tiles, exercising the running-max accumulator and
    # the fused head on the last tile.  (Default heuristic would take TN = N.)
    out, out1 = discriminator_forward(x, params, point_tile=8)
    out = jax.block_until_ready(out)
    out1 = jax.block_until_ready(out1)

    ref_out, ref_out1 = reference_forward(x, params)
    assert out.shape == (B, 1) and out1.shape == (B, features[-1])
    # Kernel matmuls use bf16 operands with f32 accumulation (per perf review);
    # compare against the f32 reference with bf16-appropriate tolerances.
    assert jnp.allclose(out1, ref_out1, atol=5e-2, rtol=5e-2)
    assert jnp.allclose(out, ref_out, atol=5e-2, rtol=5e-2)

    print("KERNEL_OK")
</pallas_src>

<mosaic_0001>
module attributes {stable_mosaic.version = 11 : i64} {
  func.func @kernel(%arg0: i32, %arg1: i32, %arg2: memref<2x8x8xbf16, #tpu.memory_space<vmem>>, %arg3: memref<8x64xbf16, #tpu.memory_space<vmem>>, %arg4: memref<1x64xf32, #tpu.memory_space<vmem>>, %arg5: memref<64x128xbf16, #tpu.memory_space<vmem>>, %arg6: memref<1x128xf32, #tpu.memory_space<vmem>>, %arg7: memref<128x128xbf16, #tpu.memory_space<vmem>>, %arg8: memref<1x128xf32, #tpu.memory_space<vmem>>, %arg9: memref<128x64xbf16, #tpu.memory_space<vmem>>, %arg10: memref<1x64xf32, #tpu.memory_space<vmem>>, %arg11: memref<64x128xbf16, #tpu.memory_space<vmem>>, %arg12: memref<1x128xf32, #tpu.memory_space<vmem>>, %arg13: memref<2x128xf32, #tpu.memory_space<vmem>>, %arg14: memref<2x128xf32, #tpu.memory_space<vmem>>) attributes {dimension_semantics = [#tpu.dimension_semantics<parallel>, #tpu.dimension_semantics<arbitrary>], iteration_bounds = array<i64: 1, 4>, scalar_prefetch = 0 : i64, scratch_operands = 0 : i64, tpu.core_type = #tpu.core_type<tc>, window_params = [{transform_indices = @transform_0, window_bounds = array<i64: 2, 8, 8>}, {pipeline_mode = #tpu.pipeline_mode<synchronous>, transform_indices = @transform_1, window_bounds = array<i64: 8, 64>}, {pipeline_mode = #tpu.pipeline_mode<synchronous>, transform_indices = @transform_2, window_bounds = array<i64: 1, 64>}, {pipeline_mode = #tpu.pipeline_mode<synchronous>, transform_indices = @transform_3, window_bounds = array<i64: 64, 128>}, {pipeline_mode = #tpu.pipeline_mode<synchronous>, transform_indices = @transform_4, window_bounds = array<i64: 1, 128>}, {pipeline_mode = #tpu.pipeline_mode<synchronous>, transform_indices = @transform_5, window_bounds = array<i64: 128, 128>}, {pipeline_mode = #tpu.pipeline_mode<synchronous>, transform_indices = @transform_6, window_bounds = array<i64: 1, 128>}, {pipeline_mode = #tpu.pipeline_mode<synchronous>, transform_indices = @transform_7, window_bounds = array<i64: 128, 64>}, {pipeline_mode = #tpu.pipeline_mode<synchronous>, transform_indices = @transform_8, window_bounds = array<i64: 1, 64>}, {pipeline_mode = #tpu.pipeline_mode<synchronous>, transform_indices = @transform_9, window_bounds = array<i64: 64, 128>}, {pipeline_mode = #tpu.pipeline_mode<synchronous>, transform_indices = @transform_10, window_bounds = array<i64: 1, 128>}, {transform_indices = @transform_11, window_bounds = array<i64: 2, 128>}, {transform_indices = @transform_12, window_bounds = array<i64: 2, 128>}]} {
    %c0_i32 = arith.constant 0 : i32
    %0 = arith.cmpi eq, %arg1, %c0_i32 : i32
    %1 = arith.extui %0 : i1 to i32
    %c0_i32_0 = arith.constant 0 : i32
    %2 = arith.cmpi ne, %1, %c0_i32_0 : i32
    scf.if %2 {
      %cst_22 = arith.constant 0xFF800000 : f32
      %34 = vector.broadcast %cst_22 : f32 to vector<2x128xf32>
      %c0_23 = arith.constant 0 : index
      %c0_24 = arith.constant 0 : index
      %35 = vector.load %arg13[%c0_23, %c0_24] : memref<2x128xf32, #tpu.memory_space<vmem>>, vector<2x128xf32>
      tpu.vector_store %arg13[%c0_23, %c0_24], %34 {strides = array<i32>} : memref<2x128xf32, #tpu.memory_space<vmem>>, vector<2x128xf32>,
      %cst_25 = arith.constant 0.000000e+00 : f32
      %36 = vector.broadcast %cst_25 : f32 to vector<2x128xf32>
      %c0_26 = arith.constant 0 : index
      %c0_27 = arith.constant 0 : index
      %37 = vector.load %arg14[%c0_26, %c0_27] : memref<2x128xf32, #tpu.memory_space<vmem>>, vector<2x128xf32>
      tpu.vector_store %arg14[%c0_26, %c0_27], %36 {strides = array<i32>} : memref<2x128xf32, #tpu.memory_space<vmem>>, vector<2x128xf32>,
    } else {
    }
    %c0 = arith.constant 0 : index
    %c0_1 = arith.constant 0 : index
    %c0_2 = arith.constant 0 : index
    %3 = vector.load %arg2[%c0, %c0_1, %c0_2] : memref<2x8x8xbf16, #tpu.memory_space<vmem>>, vector<2x8x8xbf16>
    %c0_3 = arith.constant 0 : index
    %c0_4 = arith.constant 0 : index
    %4 = vector.load %arg3[%c0_3, %c0_4] : memref<8x64xbf16, #tpu.memory_space<vmem>>, vector<8x64xbf16>
    %c0_5 = arith.constant 0 : index
    %c0_6 = arith.constant 0 : index
    %5 = vector.load %arg4[%c0_5, %c0_6] : memref<1x64xf32, #tpu.memory_space<vmem>>, vector<1x64xf32>
    "tpu.trace_start"() <{level = 10 : i32, message = "btc,cd->btd"}> : () -> ()
    %cst = arith.constant dense<0.000000e+00> : vector<2x8x64xf32>
    %6 = tpu.matmul %3, %4, %cst {dimension_numbers = #tpu.dot_dimension_numbers<[2], [0], [0, 1], [1], [0, 0, 0, 1, 1, 1], [], []>} : vector<2x8x8xbf16>, vector<8x64xbf16>, vector<2x8x64xf32> -> vector<2x8x64xf32>
    "tpu.trace_stop"() : () -> ()
    %7 = vector.shape_cast %5 : vector<1x64xf32> to vector<1x1x64xf32>
    %8 = vector.broadcast %7 : vector<1x1x64xf32> to vector<2x8x64xf32>
    %9 = arith.addf %6, %8 : vector<2x8x64xf32>
    %cst_7 = arith.constant 0.000000e+00 : f32
    %10 = vector.broadcast %cst_7 : f32 to vector<2x8x64xf32>
    %11 = arith.cmpf ogt, %9, %10 : vector<2x8x64xf32>
    %cst_8 = arith.constant 2.000000e-01 : f32
    %12 = vector.broadcast %cst_8 : f32 to vector<2x8x64xf32>
    %13 = arith.mulf %12, %9 : vector<2x8x64xf32>
    %14 = arith.select %11, %9, %13 : vector<2x8x64xi1>, vector<2x8x64xf32>
    %c0_9 = arith.constant 0 : index
    %c0_10 = arith.constant 0 : index
    %15 = vector.load %arg5[%c0_9, %c0_10] : memref<64x128xbf16, #tpu.memory_space<vmem>>, vector<64x128xbf16>
    %c0_11 = arith.constant 0 : index
    %c0_12 = arith.constant 0 : index
    %16 = vector.load %arg6[%c0_11, %c0_12] : memref<1x128xf32, #tpu.memory_space<vmem>>, vector<1x128xf32>
    %17 = arith.truncf %14 : vector<2x8x64xf32> to vector<2x8x64xbf16>
    "tpu.trace_start"() <{level = 10 : i32, message = "btc,cd->btd"}> : () -> ()
    %cst_13 = arith.constant dense<0.000000e+00> : vector<2x8x128xf32>
    %18 = tpu.matmul %17, %15, %cst_13 {dimension_numbers = #tpu.dot_dimension_numbers<[2], [0], [0, 1], [1], [0, 0, 0, 1, 1, 1], [], []>} : vector<2x8x64xbf16>, vector<64x128xbf16>, vector<2x8x128xf32> -> vector<2x8x128xf32>
    "tpu.trace_stop"() : () -> ()
    %19 = vector.shape_cast %16 : vector<1x128xf32> to vector<1x1x128xf32>
    %20 = vector.broadcast %19 : vector<1x1x128xf32> to vector<2x8x128xf32>
    %21 = arith.addf %18, %20 : vector<2x8x128xf32>
    %cst_14 = arith.constant 0.000000e+00 : f32
    %22 = vector.broadcast %cst_14 : f32 to vector<2x8x128xf32>
    %23 = arith.cmpf ogt, %21, %22 : vector<2x8x128xf32>
    %cst_15 = arith.constant 2.000000e-01 : f32
    %24 = vector.broadcast %cst_15 : f32 to vector<2x8x128xf32>
    %25 = arith.mulf %24, %21 : vector<2x8x128xf32>
    %26 = arith.select %23, %21, %25 : vector<2x8x128xi1>, vector<2x8x128xf32>
    %cst_16 = arith.constant dense<0xFF800000> : vector<2x128xf32>
    %27 = vector.multi_reduction <maximumf>, %26, %cst_16 [1] : vector<2x8x128xf32> to vector<2x128xf32>
    %c0_17 = arith.constant 0 : index
    %c0_18 = arith.constant 0 : index
    %28 = vector.load %arg13[%c0_17, %c0_18] : memref<2x128xf32, #tpu.memory_space<vmem>>, vector<2x128xf32>
    %29 = arith.maximumf %28, %27 : vector<2x128xf32>
    %c0_19 = arith.constant 0 : index
    %c0_20 = arith.constant 0 : index
    %30 = vector.load %arg13[%c0_19, %c0_20] : memref<2x128xf32, #tpu.memory_space<vmem>>, vector<2x128xf32>
    tpu.vector_store %arg13[%c0_19, %c0_20], %29 {strides = array<i32>} : memref<2x128xf32, #tpu.memory_space<vmem>>, vector<2x128xf32>,
    %c3_i32 = arith.constant 3 : i32
    %31 = arith.cmpi eq, %arg1, %c3_i32 : i32
    %32 = arith.extui %31 : i1 to i32
    %c0_i32_21 = arith.constant 0 : i32
    %33 = arith.cmpi ne, %32, %c0_i32_21 : i32
    scf.if %33 {
      %c0_22 = arith.constant 0 : index
      %c0_23 = arith.constant 0 : index
      %34 = vector.load %arg13[%c0_22, %c0_23] : memref<2x128xf32, #tpu.memory_space<vmem>>, vector<2x128xf32>
      %35 = arith.truncf %34 : vector<2x128xf32> to vector<2x128xbf16>
      %c0_24 = arith.constant 0 : index
      %c0_25 = arith.constant 0 : index
      %36 = vector.load %arg7[%c0_24, %c0_25] : memref<128x128xbf16, #tpu.memory_space<vmem>>, vector<128x128xbf16>
      %cst_26 = arith.constant dense<0.000000e+00> : vector<2x128xf32>
      %37 = tpu.matmul %35, %36, %cst_26 {dimension_numbers = #tpu.dot_dimension_numbers<[1], [0], [0], [1], [0, 0, 1, 1], [], []>} : vector<2x128xbf16>, vector<128x128xbf16>, vector<2x128xf32> -> vector<2x128xf32>
      %c0_27 = arith.constant 0 : index
      %c0_28 = arith.constant 0 : index
      %38 = vector.load %arg8[%c0_27, %c0_28] : memref<1x128xf32, #tpu.memory_space<vmem>>, vector<1x128xf32>
      %39 = vector.broadcast %38 : vector<1x128xf32> to vector<2x128xf32>
      %40 = arith.addf %37, %39 : vector<2x128xf32>
      %cst_29 = arith.constant 0.000000e+00 : f32
      %41 = vector.broadcast %cst_29 : f32 to vector<2x128xf32>
      %42 = arith.cmpf ogt, %40, %41 : vector<2x128xf32>
      %cst_30 = arith.constant 2.000000e-01 : f32
      %43 = vector.broadcast %cst_30 : f32 to vector<2x128xf32>
      %44 = arith.mulf %43, %40 : vector<2x128xf32>
      %45 = arith.select %42, %40, %44 : vector<2x128xi1>, vector<2x128xf32>
      %46 = arith.truncf %45 : vector<2x128xf32> to vector<2x128xbf16>
      %c0_31 = arith.constant 0 : index
      %c0_32 = arith.constant 0 : index
      %47 = vector.load %arg9[%c0_31, %c0_32] : memref<128x64xbf16, #tpu.memory_space<vmem>>, vector<128x64xbf16>
      %cst_33 = arith.constant dense<0.000000e+00> : vector<2x64xf32>
      %48 = tpu.matmul %46, %47, %cst_33 {dimension_numbers = #tpu.dot_dimension_numbers<[1], [0], [0], [1], [0, 0, 1, 1], [], []>} : vector<2x128xbf16>, vector<128x64xbf16>, vector<2x64xf32> -> vector<2x64xf32>
      %c0_34 = arith.constant 0 : index
      %c0_35 = arith.constant 0 : index
      %49 = vector.load %arg10[%c0_34, %c0_35] : memref<1x64xf32, #tpu.memory_space<vmem>>, vector<1x64xf32>
      %50 = vector.broadcast %49 : vector<1x64xf32> to vector<2x64xf32>
      %51 = arith.addf %48, %50 : vector<2x64xf32>
      %cst_36 = arith.constant 0.000000e+00 : f32
      %52 = vector.broadcast %cst_36 : f32 to vector<2x64xf32>
      %53 = arith.cmpf ogt, %51, %52 : vector<2x64xf32>
      %cst_37 = arith.constant 2.000000e-01 : f32
      %54 = vector.broadcast %cst_37 : f32 to vector<2x64xf32>
      %55 = arith.mulf %54, %51 : vector<2x64xf32>
      %56 = arith.select %53, %51, %55 : vector<2x64xi1>, vector<2x64xf32>
      %57 = arith.truncf %56 : vector<2x64xf32> to vector<2x64xbf16>
      %c0_38 = arith.constant 0 : index
      %c0_39 = arith.constant 0 : index
      %58 = vector.load %arg11[%c0_38, %c0_39] : memref<64x128xbf16, #tpu.memory_space<vmem>>, vector<64x128xbf16>
      %cst_40 = arith.constant dense<0.000000e+00> : vector<2x128xf32>
      %59 = tpu.matmul %57, %58, %cst_40 {dimension_numbers = #tpu.dot_dimension_numbers<[1], [0], [0], [1], [0, 0, 1, 1], [], []>} : vector<2x64xbf16>, vector<64x128xbf16>, vector<2x128xf32> -> vector<2x128xf32>
      %c0_41 = arith.constant 0 : index
      %c0_42 = arith.constant 0 : index
      %60 = vector.load %arg12[%c0_41, %c0_42] : memref<1x128xf32, #tpu.memory_space<vmem>>, vector<1x128xf32>
      %61 = vector.broadcast %60 : vector<1x128xf32> to vector<2x128xf32>
      %62 = arith.addf %59, %61 : vector<2x128xf32>
      %cst_43 = arith.constant 0.000000e+00 : f32
      %63 = vector.broadcast %cst_43 : f32 to vector<2x128xf32>
      %64 = arith.subf %63, %62 : vector<2x128xf32>
      %65 = math.exp %64 : vector<2x128xf32>
      %cst_44 = arith.constant 1.000000e+00 : f32
      %66 = vector.broadcast %cst_44 : f32 to vector<2x128xf32>
      %67 = arith.addf %66, %65 : vector<2x128xf32>
      %cst_45 = arith.constant 1.000000e+00 : f32
      %68 = vector.broadcast %cst_45 : f32 to vector<2x128xf32>
      %69 = arith.divf %68, %67 : vector<2x128xf32>
      %c0_46 = arith.constant 0 : index
      %c0_47 = arith.constant 0 : index
      %70 = vector.load %arg14[%c0_46, %c0_47] : memref<2x128xf32, #tpu.memory_space<vmem>>, vector<2x128xf32>
      tpu.vector_store %arg14[%c0_46, %c0_47], %69 {strides = array<i32>} : memref<2x128xf32, #tpu.memory_space<vmem>>, vector<2x128xf32>,
    } else {
    }
    return
  }
  func.func @transform_0(%arg0: i32, %arg1: i32) -> (i32, i32, i32) {
    %c0_i32 = arith.constant 0 : i32
    %c0_i32_0 = arith.constant 0 : i32
    return %arg0, %arg1, %c0_i32 : i32, i32, i32
  }
  func.func @transform_1(%arg0: i32, %arg1: i32) -> (i32, i32) {
    %c0_i32 = arith.constant 0 : i32
    %c0_i32_0 = arith.constant 0 : i32
    %c0_i32_1 = arith.constant 0 : i32
    return %c0_i32, %c0_i32_0 : i32, i32
  }
  func.func @transform_2(%arg0: i32, %arg1: i32) -> (i32, i32) {
    %c0_i32 = arith.constant 0 : i32
    %c0_i32_0 = arith.constant 0 : i32
    %c0_i32_1 = arith.constant 0 : i32
    return %c0_i32, %c0_i32_0 : i32, i32
  }
  func.func @transform_3(%arg0: i32, %arg1: i32) -> (i32, i32) {
    %c0_i32 = arith.constant 0 : i32
    %c0_i32_0 = arith.constant 0 : i32
    %c0_i32_1 = arith.constant 0 : i32
    return %c0_i32, %c0_i32_0 : i32, i32
  }
  func.func @transform_4(%arg0: i32, %arg1: i32) -> (i32, i32) {
    %c0_i32 = arith.constant 0 : i32
    %c0_i32_0 = arith.constant 0 : i32
    %c0_i32_1 = arith.constant 0 : i32
    return %c0_i32, %c0_i32_0 : i32, i32
  }
  func.func @transform_5(%arg0: i32, %arg1: i32) -> (i32, i32) {
    %c0_i32 = arith.constant 0 : i32
    %c0_i32_0 = arith.constant 0 : i32
    %c0_i32_1 = arith.constant 0 : i32
    return %c0_i32, %c0_i32_0 : i32, i32
  }
  func.func @transform_6(%arg0: i32, %arg1: i32) -> (i32, i32) {
    %c0_i32 = arith.constant 0 : i32
    %c0_i32_0 = arith.constant 0 : i32
    %c0_i32_1 = arith.constant 0 : i32
    return %c0_i32, %c0_i32_0 : i32, i32
  }
  func.func @transform_7(%arg0: i32, %arg1: i32) -> (i32, i32) {
    %c0_i32 = arith.constant 0 : i32
    %c0_i32_0 = arith.constant 0 : i32
    %c0_i32_1 = arith.constant 0 : i32
    return %c0_i32, %c0_i32_0 : i32, i32
  }
  func.func @transform_8(%arg0: i32, %arg1: i32) -> (i32, i32) {
    %c0_i32 = arith.constant 0 : i32
    %c0_i32_0 = arith.constant 0 : i32
    %c0_i32_1 = arith.constant 0 : i32
    return %c0_i32, %c0_i32_0 : i32, i32
  }
  func.func @transform_9(%arg0: i32, %arg1: i32) -> (i32, i32) {
    %c0_i32 = arith.constant 0 : i32
    %c0_i32_0 = arith.constant 0 : i32
    %c0_i32_1 = arith.constant 0 : i32
    return %c0_i32, %c0_i32_0 : i32, i32
  }
  func.func @transform_10(%arg0: i32, %arg1: i32) -> (i32, i32) {
    %c0_i32 = arith.constant 0 : i32
    %c0_i32_0 = arith.constant 0 : i32
    %c0_i32_1 = arith.constant 0 : i32
    return %c0_i32, %c0_i32_0 : i32, i32
  }
  func.func @transform_11(%arg0: i32, %arg1: i32) -> (i32, i32) {
    %c0_i32 = arith.constant 0 : i32
    %c0_i32_0 = arith.constant 0 : i32
    return %arg0, %c0_i32 : i32, i32
  }
  func.func @transform_12(%arg0: i32, %arg1: i32) -> (i32, i32) {
    %c0_i32 = arith.constant 0 : i32
    %c0_i32_0 = arith.constant 0 : i32
    return %arg0, %c0_i32 : i32, i32
  }
}

</mosaic_0001>

<bundles_post_ra>
// kernel: tpu_custom_call.1
= control target key start
LH: loop header
LB: loop body
LE: loop exit
PB: predicated region body
PF: predicated region fallthrough
CT: control target
= control target key end

     0   :  { %18 = vsyncpa [#allocation4], 0  ;;  %s1704_s0 = inlined_call_operand.vmem [shape: bf16[2,32,8], index: 0, kind: input, shape index: {}]   ;;  %s1705_s1 = inlined_call_operand.vmem [shape: bf16[8,64], index: 1, kind: input, shape index: {}]   ;;  %s1706_s2 = inlined_call_operand.vmem [shape: f32[1,64], index: 2, kind: input, shape index: {}]   ;;  %s1707_s3 = inlined_call_operand.vmem [shape: bf16[64,128], index: 3, kind: input, shape index: {}]   ;;  %s1708_s4 = inlined_call_operand.vmem [shape: f32[1,128], index: 4, kind: input, shape index: {}]   ;;  %s1709_s5 = inlined_call_operand.vmem [shape: bf16[128,128], index: 5, kind: input, shape index: {}]   ;;  %s1710_s6 = inlined_call_operand.vmem [shape: f32[1,128], index: 6, kind: input, shape index: {}]   ;;  %s1711_s7 = inlined_call_operand.vmem [shape: bf16[128,64], index: 7, kind: input, shape index: {}]   ;;  %s1712_s8 = inlined_call_operand.vmem [shape: f32[1,64], index: 8, kind: input, shape index: {}]   ;;  %s1713_s9 = inlined_call_operand.vmem [shape: bf16[64,128], index: 9, kind: input, shape index: {}]   ;;  %s1714_s10 = inlined_call_operand.vmem [shape: f32[1,128], index: 10, kind: input, shape index: {}]   ;;  %s1715_s11 = inlined_call_operand.hbm [shape: f32[2,128], index: 11, kind: output, shape index: {0}]   ;;  %s1716_s12 = inlined_call_operand.hbm [shape: f32[2,128], index: 12, kind: output, shape index: {1}]  }
   0x1   :  { %19 = vsyncpa [#allocation6], 0  ;;  %s1494_s21 = smov 0   ;;  %s1496_s22 = smov 0  }
   0x2   :  { %s1498_s23 = smov 0   ;;  %s1500_s24 = smov 0  }
   0x3   :  { %s1502_s25 = smov 0  }
   0x4 LB: > { %s1086_s26 = sadd.s32 4294967295, %s1419_s25   ;;  %s34_s27 = sadd.s32 1, %s1415_s24  ;;  %s1419_s25 = sphi %s1502_s25, %s25_s25   ;;  %s1415_s24 = sphi %s1500_s24, %s1721_s24   ;;  %s1411_s23 = sphi %s1498_s23, %s1720_s23   ;;  %s1407_s22 = sphi %s1496_s22, %s1719_s22   ;;  %s1403_s21 = sphi %s1494_s21, %s1718_s21  }
   0x5   : > { %p35_p0 = scmp.ge.s32.totalorder %s34_s27, 4  ;;  %p53_p1 = scmp.ne.s32.totalorder %s1407_s22, %s1403_s21 }
   0x6   : > { %p54_p2 = scmp.eq.s32.totalorder %s1419_s25, 0  ;;  %s46_s29 = sadd.s32 1, %s1407_s22 }
   0x7   : > { %s1723_s27 = smov (%p35_p0, %s34_s27), 0  ;;  %p1088_p5 = scmp.ge.s32.totalorder %s1419_s25, 4 }
   0x8   : > { %p55_p3 = por %p54_p2, %p53_p1  ;;  %s42_s28 = ssub.s32 %s1415_s24, %s1723_s27 }
   0x9   : > { %p44_p4 = scmp.eq.s32.totalorder %s42_s28, 0  ;;  %371 = sbr.rel (%p1088_p5) target bundleno = 19 (0x13), region = 56 }
   0xb   : > { %s1530_s30 = scalar_select %p44_p4, %s1407_s22, %s46_s29  }
   0xe   : > { %374 = sbr.rel (!%p55_p3) target bundleno = 19 (0x13), region = 60  ;;  %s376_s13 = sand.u32 (%p55_p3), 1, %s1407_s22  }
   0xf   : > { %s1090_s14 = sshll.u32 (%p55_p3), %s1415_s24, 2  ;;  %s1089_s15 = sshll.u32 (%p55_p3), %s376_s13, 3 }
  0x10   : > { %s383_s18 = scalar_lea.vmem (%p55_p3), %s1704_s0, %s1090_s14  ;;  %s378_s19 = scalar_lea.vmem (%p55_p3), [#allocation2], %s1089_s15 }
  0x11   : > { %v400_v0 = vld [vmem:[%s383_s18] sm:$0xf] (%p55_p3)  ;;  %v402_v1 = vld [vmem:[%s383_s18 + $0x10] sm:$0xf] (%p55_p3) }
  0x12   : > { %401 = vst [vmem:[%s378_s19] sm:$0xf] (%p55_p3), %v400_v0  ;;  %403 = vst [vmem:[%s378_s19 + $0x4] sm:$0xf] (%p55_p3), %v402_v1 }
  0x13 PF: > { %p1091_p6 = scmp.ge.s32.totalorder %s1419_s25, 1  ;;  %p430_p7 = scmp.lt.s32.totalorder %s1419_s25, 5 }
  0x15   : > { %p431_p8 = pnand %p1091_p6, %p430_p7 }
  0x16   : > { %s437_s20 = sand.u32 (!%p431_p8), 1, %s1403_s21   ;;  %p1093_p9 = scmp.ne.s32.totalorder (!%p431_p8), %s1411_s23, 0 }
  0x17   : > { %434 = sbr.rel (%p431_p8) target bundleno = 1153 (0x481), region = 101  ;;  %s1092_s28 = sshll.u32 (!%p431_p8), %s437_s20, 3 }
  0x18   : > { %s439_s29 = scalar_lea.vmem (!%p431_p8), [#allocation2], %s1092_s28 }
  0x1c   : > { %478 = sbr.rel (%p1093_p9) target bundleno = 35 (0x23), region = 109 }
  0x21   : > { %v1421_v2 = vmov -inf   ;;  %v1422_v3 = vmov 0.0  }
  0x22   : > { %479 = vst [vmem:[#allocation3] sm:$0x3] %v1421_v2  ;;  %480 = vst [vmem:[#allocation5] sm:$0x3] %v1422_v3 }
  0x23 PF: > { %v483_v4 = vld [vmem:[%s1705_s1] sm:$0xf]  ;;  %vm500_vm0 = vcmask 1043456   ;;  %v1423_v5 = vmov 0.0   ;;  %vm1424_vm1 = vmmov 0   ;;  %vm496_vm2 = vcmask 64512  }
  0x24   : > { %1166 = vmatprep.subr.bf16.mxu0 %v1423_v5  ;;  %v502_v6 = vsel %vm500_vm0, %v483_v4, 0  ;;  %1168 = vmatprep.mubr.msk.bf16.mxu0 %vm1424_vm1, %v1423_v5  ;;  %v1296_v7 = vld [vmem:[%s439_s29] sm:$0xff]   ;;  %v1297_v8 = vld [vmem:[%s1707_s3 + $0x18] sm:$0xff]   ;;  %v1298_v9 = vld [vmem:[%s1707_s3 + $0x10] sm:$0xff]   ;;  %vm597_vm5 = vcmask 523264   ;;  %vm663_vm8 = vcmask 1041409  }
  0x25   : > { %1167 = vmatpush3.bf16.msra.mxu0 %v502_v6  ;;  %1172 = vmatprep.subr.bf16.mxu1 %v1423_v5  ;;  %v1299_v10 = vld [vmem:[%s1707_s3 + $0x8] sm:$0xff]   ;;  %v1300_v11 = vld [vmem:[%s1707_s3] sm:$0xff]   ;;  %p1104_p10 = scmp.ne.s32.totalorder %s1411_s23, 3 }
  0x26   : > { %1180 = vmatprep.mubr.msk.bf16.mxu1 %vm1424_vm1, %v1423_v5  ;;  %1173 = vmatpush3.bf16.msra.mxu1 %v1297_v8  ;;  %v1094_v12 = vld [vmem:[%s1706_s2] ss:$0 sm:$0xff] }
  0x27   : > { %1174 = vmatprep.subr.bf16.mxu1 %v1423_v5  ;;  %v1097_v24 = vld [vmem:[%s1708_s4] ss:$0 sm:$0xff] }
  0x28   : > { %1169 = vmatmul.mubr.msk.bf16.vlgmr.msra.gmra.mxu0 %vm496_vm2, %v1296_v7 }
  0x29   : > { %v660_v47 = vld [vmem:[#allocation3] sm:$0x3] }
  0x2a   : > { %1175 = vmatpush3.bf16.msra.mxu1 %v1298_v9 }
  0x2b   : > { %1176 = vmatprep.subr.bf16.mxu1 %v1423_v5 }
  0x2e   : > { %1177 = vmatpush3.bf16.msra.mxu1 %v1299_v10 }
  0x2f   : > { %1178 = vmatprep.subr.bf16.mxu1 %v1423_v5 }
  0x32   : > { %1179 = vmatpush3.bf16.msra.mxu1 %v1300_v11 }
  0xe8   : > { %v538_v13 = vpop.f32.mrf.mxu0 }
  0xe9   : > { %v539_v14 = vadd.f32 %v1094_v12, %v538_v13 }
  0xea   : > { %v1170_v15 = vpop.f32.mrf.mxu0 }
  0xeb   : > { %v547_v17 = vmul.f32 0.2, %v539_v14  ;;  %vm545_vm3 = vcmp.gt.f32.partialorder %v539_v14, 0.0 }
  0xec   : > { %v541_v16 = vpop.f32.mrf.mxu0 }
  0xed   : > { %v542_v18 = vadd.f32 %v1094_v12, %v541_v16  ;;  %v549_v21 = vsel %vm545_vm3, %v539_v14, %v547_v17 }
  0xee   : > { %v1171_v19 = vpop.f32.mrf.mxu0 }
  0xef   : > { %vm546_vm4 = vcmp.gt.f32.partialorder %v542_v18, 0.0  ;;  %v548_v20 = vmul.f32 0.2, %v542_v18 }
  0xf1   : > { %v550_v22 = vsel %vm546_vm4, %v542_v18, %v548_v20 }
  0xf2   : > { %v1135_v23 = vpack.c.bf16 %v550_v22, %v549_v21 }
  0xf4   : > { %1181 = vmatmul.mubr.msk.bf16.vlgmr.msra.gmra.mxu1 %vm597_vm5, %v1135_v23 }
 0x1b4   : > { %v635_v25 = vpop.f32.mrf.mxu1 }
 0x1b5   : > { %v636_v26 = vadd.f32 %v1097_v24, %v635_v25 }
 0x1b6   : > { %v1182_v27 = vpop.f32.mrf.mxu1 }
 0x1b7   : > { %vm642_vm6 = vcmp.gt.f32.partialorder %v636_v26, 0.0  ;;  %v644_v28 = vmul.f32 0.2, %v636_v26 }
 0x1b8   : > { %v638_v29 = vpop.f32.mrf.mxu1 }
 0x1b9   : > { %v646_v30 = vsel %vm642_vm6, %v636_v26, %v644_v28  ;;  %v639_v31 = vadd.f32 %v1097_v24, %v638_v29 }
 0x1ba   : > { %v648_v32 = vrot.slane %v646_v30, 4  ;;  %v1183_v33 = vpop.f32.mrf.mxu1 }
 0x1bb   : > { %vm643_vm7 = vcmp.gt.f32.partialorder %v639_v31, 0.0  ;;  %v645_v34 = vmul.f32 0.2, %v639_v31 }
 0x1bc   : > { %v649_v35 = vmax.f32 %v646_v30, %v648_v32 }
 0x1bd   : > { %v647_v36 = vsel %vm643_vm7, %v639_v31, %v645_v34 }
 0x1be   : > { %v650_v37 = vrot.slane %v649_v35, 2  ;;  %v654_v38 = vrot.slane %v647_v36, 4 }
 0x1c0   : > { %v651_v39 = vmax.f32 %v649_v35, %v650_v37  ;;  %v655_v40 = vmax.f32 %v647_v36, %v654_v38 }
 0x1c2   : > { %v656_v41 = vrot.slane %v655_v40, 2  ;;  %v652_v42 = vrot.slane %v651_v39, 1 }
 0x1c4   : > { %v657_v43 = vmax.f32 %v655_v40, %v656_v41  ;;  %v653_v45 = vmax.f32 %v651_v39, %v652_v42 }
 0x1c6   : > { %v658_v44 = vrot.slane %v657_v43, 1 }
 0x1c8   : > { %v659_v46 = vmax.f32 %v657_v43, %v658_v44 }
 0x1c9   : > { %671 = sbr.rel (%p1104_p10) target bundleno = 1125 (0x465), region = 113 }
 0x1ca   : > { %v664_v48 = vsel %vm663_vm8, %v659_v46, %v653_v45 }
 0x1cb   : > { %v666_v49 = vmax.f32 %v660_v47, %v664_v48 }
 0x1cd   : > { %667 = vst [vmem:[#allocation3] sm:$0x3] %v666_v49 }
 0x1ce   : > { %v1301_v50 = vld [vmem:[%s1709_s5 + $0x38] sm:$0xff]   ;;  %v1425_v51 = vmov 0.0   ;;  %v1302_v52 = vld [vmem:[%s1709_s5 + $0x30] sm:$0xff]   ;;  %vm1426_vm9 = vmmov 0   ;;  %v1303_v53 = vld [vmem:[%s1709_s5 + $0x28] sm:$0xff]  }
 0x1cf   : > { %1184 = vmatprep.subr.bf16.mxu0 %v1425_v51  ;;  %1204 = vmatprep.subr.bf16.mxu1 %v1425_v51  ;;  %v1309_v54 = vld [vmem:[%s1711_s7 + $0x38] sm:$0xff]   ;;  %v1304_v55 = vld [vmem:[%s1709_s5 + $0x20] sm:$0xff]   ;;  %v1310_v56 = vld [vmem:[%s1711_s7 + $0x30] sm:$0xff]  }
 0x1d0   : > { %1185 = vmatpush3.bf16.msra.mxu0 %v1301_v50  ;;  %1200 = vmatprep.mubr.msk.bf16.mxu0 %vm1426_vm9, %v1425_v51  ;;  %v1305_v57 = vld [vmem:[%s1709_s5 + $0x18] sm:$0xff]   ;;  %v1311_v58 = vld [vmem:[%s1711_s7 + $0x28] sm:$0xff]   ;;  %v1306_v59 = vld [vmem:[%s1709_s5 + $0x10] sm:$0xff]  }
 0x1d1   : > { %1186 = vmatprep.subr.bf16.mxu0 %v1425_v51  ;;  %1220 = vmatprep.mubr.msk.bf16.mxu1 %vm1426_vm9, %v1425_v51  ;;  %v1312_v60 = vld [vmem:[%s1711_s7 + $0x20] sm:$0xff]   ;;  %v1307_v61 = vld [vmem:[%s1709_s5 + $0x8] sm:$0xff]   ;;  %v1313_v62 = vld [vmem:[%s1711_s7 + $0x18] sm:$0xff]  }
 0x1d2   : > { %1205 = vmatpush3.bf16.msra.mxu1 %v1309_v54  ;;  %v1308_v63 = vld [vmem:[%s1709_s5] sm:$0xff]   ;;  %v1314_v1 = vld [vmem:[%s1711_s7 + $0x10] sm:$0xff]   ;;  %v1315_v3 = vld [vmem:[%s1711_s7 + $0x8] sm:$0xff]  }
 0x1d3   : > { %1206 = vmatprep.subr.bf16.mxu1 %v1425_v51  ;;  %v1316_v4 = vld [vmem:[%s1711_s7] sm:$0xff]   ;;  %v1317_v5 = vld [vmem:[%s1713_s9 + $0x18] sm:$0xff]   ;;  %v1318_v6 = vld [vmem:[%s1713_s9 + $0x10] sm:$0xff]  }
 0x1d4   : > { %1187 = vmatpush3.bf16.msra.mxu0 %v1302_v52  ;;  %v672_v0 = vld [vmem:[#allocation3] sm:$0x3]  ;;  %v1105_v7 = vld [vmem:[%s1710_s6] ss:$0 sm:$0xff]  ;;  %v1319_v16 = vld [vmem:[%s1713_s9 + $0x8] sm:$0xff]  }
 0x1d5   : > { %1188 = vmatprep.subr.bf16.mxu0 %v1425_v51  ;;  %v673_v2 = vpack.c.bf16 %v672_v0, %v672_v0  ;;  %v1320_v17 = vld [vmem:[%s1713_s9] sm:$0xff]  }
 0x1d6   : > { %1207 = vmatpush3.bf16.msra.mxu1 %v1310_v56  ;;  %v1114_v18 = vld [vmem:[%s1712_s8] ss:$0 sm:$0xff] }
 0x1d7   : > { %1208 = vmatprep.subr.bf16.mxu1 %v1425_v51  ;;  %v1123_v27 = vld [vmem:[%s1714_s10] ss:$0 sm:$0xff] }
 0x1d8   : > { %1189 = vmatpush3.bf16.msra.mxu0 %v1303_v53 }
 0x1d9   : > { %1190 = vmatprep.subr.bf16.mxu0 %v1425_v51 }
 0x1da   : > { %1209 = vmatpush3.bf16.msra.mxu1 %v1311_v58 }
 0x1db   : > { %1210 = vmatprep.subr.bf16.mxu1 %v1425_v51 }
 0x1dc   : > { %1191 = vmatpush3.bf16.msra.mxu0 %v1304_v55 }
 0x1dd   : > { %1192 = vmatprep.subr.bf16.mxu0 %v1425_v51 }
 0x1de   : > { %1211 = vmatpush3.bf16.msra.mxu1 %v1312_v60 }
 0x1df   : > { %1212 = vmatprep.subr.bf16.mxu1 %v1425_v51 }
 0x1e0   : > { %1193 = vmatpush3.bf16.msra.mxu0 %v1305_v57 }
 0x1e1   : > { %1194 = vmatprep.subr.bf16.mxu0 %v1425_v51 }
 0x1e2   : > { %1213 = vmatpush3.bf16.msra.mxu1 %v1313_v62 }
 0x1e3   : > { %1214 = vmatprep.subr.bf16.mxu1 %v1425_v51 }
 0x1e4   : > { %1195 = vmatpush3.bf16.msra.mxu0 %v1306_v59 }
 0x1e5   : > { %1196 = vmatprep.subr.bf16.mxu0 %v1425_v51 }
 0x1e6   : > { %1215 = vmatpush3.bf16.msra.mxu1 %v1314_v1 }
 0x1e7   : > { %1216 = vmatprep.subr.bf16.mxu1 %v1425_v51 }
 0x1e8   : > { %1197 = vmatpush3.bf16.msra.mxu0 %v1307_v61 }
 0x1e9   : > { %1198 = vmatprep.subr.bf16.mxu0 %v1425_v51 }
 0x1ea   : > { %1217 = vmatpush3.bf16.msra.mxu1 %v1315_v3 }
 0x1eb   : > { %1218 = vmatprep.subr.bf16.mxu1 %v1425_v51 }
 0x1ec   : > { %1199 = vmatpush3.bf16.msra.mxu0 %v1308_v63 }
 0x1ed   : > { %1224 = vmatprep.subr.bf16.mxu0 %v1425_v51 }
 0x1ee   : > { %1219 = vmatpush3.bf16.msra.mxu1 %v1316_v4 }
 0x1ef   : > { %1201 = vmatmul.mubr.bf16.vlgmr.msra.gmra.mxu0 %v673_v2 }
 0x1f0   : > { %1232 = vmatprep.mubr.msk.bf16.mxu0 %vm1426_vm9, %v1425_v51  ;;  %1225 = vmatpush3.bf16.msra.mxu0 %v1317_v5 }
 0x1f1   : > { %1226 = vmatprep.subr.bf16.mxu0 %v1425_v51 }
 0x1f4   : > { %1227 = vmatpush3.bf16.msra.mxu0 %v1318_v6 }
 0x1f5   : > { %1228 = vmatprep.subr.bf16.mxu0 %v1425_v51 }
 0x1f8   : > { %1229 = vmatpush3.bf16.msra.mxu0 %v1319_v16 }
 0x1f9   : > { %1230 = vmatprep.subr.bf16.mxu0 %v1425_v51 }
 0x1fc   : > { %1231 = vmatpush3.bf16.msra.mxu0 %v1320_v17 }
 0x2af   : > { %v779_v8 = vpop.f32.mrf.mxu0 }
 0x2b0   : > { %v780_v9 = vadd.f32 %v1105_v7, %v779_v8 }
 0x2b1   : > { %v1202_v10 = vpop.f32.mrf.mxu0 }
 0x2b2   : > { %vm785_vm10 = vcmp.gt.f32.partialorder %v780_v9, 0.0  ;;  %v786_v11 = vmul.f32 0.2, %v780_v9 }
 0x2b3   : > { %v782_v12 = vpop.f32.mrf.mxu0 }
 0x2b4   : > { %v787_v13 = vsel %vm785_vm10, %v780_v9, %v786_v11 }
 0x2b5   : > { %v1203_v14 = vpop.f32.mrf.mxu0  ;;  %v788_v15 = vpack.c.bf16 %v787_v13, %v787_v13 }
 0x2b7   : > { %1221 = vmatmul.mubr.bf16.vlgmr.msra.gmra.mxu1 %v788_v15 }
 0x377   : > { %v894_v19 = vpop.f32.mrf.mxu1 }
 0x378   : > { %v895_v20 = vadd.f32 %v1114_v18, %v894_v19 }
 0x379   : > { %v1222_v21 = vpop.f32.mrf.mxu1 }
 0x37a   : > { %vm900_vm11 = vcmp.gt.f32.partialorder %v895_v20, 0.0  ;;  %v901_v22 = vmul.f32 0.2, %v895_v20 }
 0x37b   : > { %v897_v23 = vpop.f32.mrf.mxu1 }
 0x37c   : > { %v902_v24 = vsel %vm900_vm11, %v895_v20, %v901_v22 }
 0x37d   : > { %v903_v25 = vpack.c.bf16 %v902_v24, %v902_v24  ;;  %v1223_v26 = vpop.f32.mrf.mxu1 }
 0x37f   : > { %1233 = vmatmul.mubr.msk.bf16.vlgmr.msra.gmra.mxu0 %vm597_vm5, %v903_v25 }
 0x43f   : > { %v980_v28 = vpop.f32.mrf.mxu0 }
 0x440   : > { %v981_v29 = vadd.f32 %v1123_v27, %v980_v28 }
 0x441   : > { %v1234_v30 = vpop.f32.mrf.mxu0 }
 0x442   : > { %v986_v31 = vsub.f32 0.0, %v981_v29 }
 0x443   : > { %v983_v32 = vpop.f32.mrf.mxu0 }
 0x444   : > { %v987_v33 = vmul.f32 1.442695, %v986_v31 }
 0x445   : > { %v1235_v34 = vpop.f32.mrf.mxu0 }
 0x446   : > { %1321 = vpow2.f32 %v987_v33 }
 0x453   : > { %v1322_v35 = vpop.eup %1321 }
 0x454   : > { %v989_v36 = vadd.f32 1.0, %v1322_v35 }
 0x456   : > { %1323 = vrcp.f32 %v989_v36 }
 0x463   : > { %v1324_v37 = vpop.eup %1323 }
 0x464   : > { %992 = vst [vmem:[#allocation5] sm:$0x3] %v1324_v37 }
 0x465 PF: > { %p1663_p11 = scmp.eq.s32.totalorder %s1086_s26, 3  ;;  %s1427_s21 = smov [#allocation3]  }
 0x466   : > { %s1002_s15 = sshll.u32 %s1427_s21, 4  ;;  %s1428_s16 = smov [#allocation5]   ;;  %s1003_s15 = int_to_ptr.vmem [resolvable:$true] %s1002_s15 }
 0x467   : > { %s1015_s17 = sshll.u32 %s1428_s16, 4  ;;  %s1325_s18 = scalar_lea.vmem %s1003_s15, 32  ;;  %s1016_s17 = int_to_ptr.vmem [resolvable:$true] %s1015_s17 }
 0x468   : > { %p1326_p12 = scmp.ne.s32.totalorder %s1003_s15, %s1325_s18  ;;  %p1332_p1 = scmp.lt.s32.totalorder %s1003_s15, %s1003_s15 }
 0x469   : > { %p1333_p2 = scmp.lt.s32.totalorder %s1325_s18, %s1325_s18 }
 0x46a   : > { %p1327_p13 = pnand %p1326_p12, %p1663_p11 }
 0x46b   : > { %p1334_p3 = por %p1333_p2, %p1332_p1 }
 0x46c   : > { %p1328_p0 = pneg %p1327_p13 }
 0x46e   : > { %p1335_p4 = pnand %p1334_p3, %p1328_p0 }
 0x470   : > { %1338 = shalt.err (!%p1335_p4)
}
 0x471   : > { %1237 = dma.vmem_to_hbm [thread:$0]  (%p1663_p11), %s1003_s15, 32, %s1715_s11, [#allocation4]  }
 0x472   : > { %s1349_s19 = scalar_lea.vmem %s1016_s17, 32  ;;  %p1356_p8 = scmp.lt.s32.totalorder %s1016_s17, %s1016_s17 }
 0x473   : > { %p1350_p5 = scmp.ne.s32.totalorder %s1016_s17, %s1349_s19  ;;  %p1357_p9 = scmp.lt.s32.totalorder %s1349_s19, %s1349_s19 }
 0x475   : > { %p1351_p6 = pnand %p1350_p5, %p1663_p11  ;;  %p1358_p10 = por %p1357_p9, %p1356_p8 }
 0x477   : > { %p1352_p7 = pneg %p1351_p6 }
 0x479   : > { %p1359_p12 = pnand %p1358_p10, %p1352_p7 }
 0x47b   : > { %1362 = shalt.err (!%p1359_p12)
}
 0x47c   : > { %1239 = dma.vmem_to_hbm [thread:$0]  (%p1663_p11), %s1016_s17, 32, %s1716_s12, [#allocation6]  }
 0x47d   : > { %1394 = dma.done.wait (%p1663_p11), [#allocation4], 32  }
 0x47e   : > { %1396 = vsyncadd (%p1663_p11), [#allocation4], 4294967264 }
 0x47f   : > { %1398 = dma.done.wait (%p1663_p11), [#allocation6], 32  }
 0x480   : > { %1400 = vsyncadd (%p1663_p11), [#allocation6], 4294967264 }
 0x481 PF: > { %s25_s25 = sadd.s32 1, %s1419_s25   ;;  %s1718_s21 = smov %s1407_s22 }
 0x482   : > { %p22_p13 = scmp.ge.s32.totalorder %s25_s25, 6   ;;  %s1719_s22 = smov %s1530_s30 }
 0x483   : > { %s1720_s23 = smov %s1415_s24  ;;  %s1721_s24 = smov %s1723_s27 }
 0x484   :  { %24 = sbr.rel (!%p22_p13) target bundleno = 4 (0x4), region = 155 }
 0x489   :  { %1032 = vsyncpa [#allocation4], 1 }
 0x48a   :  { %1034 = vsyncpa [#allocation4 + $0x1], 1 }
 0x48b   :  { %1035 = vsyncpa [#allocation6], 1 }

</bundles_post_ra>
